<compile_context>
chip_gen: v5e
topology: v5e:2x2
jax: 0.10.0
libtpu: 0.0.40
codegen_flags: <defaults>
</compile_context>

<pallas_src>
import functools

import jax
import jax.numpy as jnp
from jax.experimental import pallas as pl
from jax.experimental.pallas import tpu as pltpu


def _round_up(x: int, m: int) -> int:
    return ((x + m - 1) // m) * m


def _user_encoder_kernel(x_ref, w_ref, g_ref, b_ref, o_ref, *, h_real: int):
    """One batch tile: h = x @ W2 on the MXU, then f32 LayerNorm(H) + ReLU."""
    # (bt, MKp) @ (MKp, Hp) -> (bt, Hp), f32 accumulation.
    h = jnp.dot(x_ref[...], w_ref[...], preferred_element_type=jnp.float32)

    hp = h.shape[-1]
    # Mask the padded H columns: W/gamma/beta padding is zero, but the centered
    # term (h - mean) would not be, so mask explicitly and divide by real H.
    col = jax.lax.broadcasted_iota(jnp.int32, (1, hp), 1)
    mask = (col < h_real).astype(jnp.float32)
    inv_h = jnp.float32(1.0 / h_real)

    mean = jnp.sum(h * mask, axis=-1, keepdims=True) * inv_h
    centered = (h - mean) * mask
    var = jnp.sum(centered * centered, axis=-1, keepdims=True) * inv_h
    nrm = centered * jax.lax.rsqrt(var + 1e-5)

    out = nrm * g_ref[...] + b_ref[...]
    # ReLU; dropout is identity at inference time.
    # TODO(synk): training-mode dropout (pltpu.prng_* mask + 1/(1-p) scale) not emitted.
    o_ref[...] = jnp.maximum(out, 0.0).astype(o_ref.dtype)


def user_encoder_forward(x, W, gamma, beta, *, weight_sharing=True,
                         compute_dtype=jnp.bfloat16):
    """x: (B, M, K), W: (M, K, H), gamma/beta: (H,)  ->  (B, H) float32."""
    B, M, K = x.shape
    H = W.shape[-1]
    MK = M * K

    # Fold the CFNADE reverse-cumsum into the weights on the host (exact, f32):
    # (x @ tril(ones)) @ W_m == x @ cumsum_K(W_m).
    Wf = W.astype(jnp.float32)
    if weight_sharing:
        Wf = jnp.cumsum(Wf, axis=1)
    W2 = Wf.reshape(MK, H)
    x2 = x.reshape(B, MK)              # contiguous reshape, no transpose

    # TPU-friendly padding: sublanes (8) for B, lanes (128) for M*K and H.
    if B <= 128:
        Bp = bt = _round_up(B, 8)
    else:
        Bp, bt = _round_up(B, 128), 128
    MKp = _round_up(MK, 128)
    Hp = _round_up(H, 128)
    nb = Bp // bt

    x_p = jnp.zeros((Bp, MKp), compute_dtype).at[:B, :MK].set(
        x2.astype(compute_dtype))
    w_p = jnp.zeros((MKp, Hp), compute_dtype).at[:MK, :H].set(
        W2.astype(compute_dtype))
    g_p = jnp.zeros((1, Hp), jnp.float32).at[:, :H].set(
        gamma.reshape(1, H).astype(jnp.float32))
    b_p = jnp.zeros((1, Hp), jnp.float32).at[:, :H].set(
        beta.reshape(1, H).astype(jnp.float32))

    # NOTE: the full (MKp, Hp) folded-weight tile lives in VMEM.  For very large
    # M*K*H, tile the M*K axis with an "arbitrary" reduction grid + f32
    # accumulator and/or raise vmem_limit_bytes (v7x: 64 MiB VMEM per TC vs
    # 128 MiB on v5e/v6e).
    out_p = pl.pallas_call(
        functools.partial(_user_encoder_kernel, h_real=H),
        out_shape=jax.ShapeDtypeStruct((Bp, Hp), jnp.float32),
        grid=(nb,),
        in_specs=[
            pl.BlockSpec((bt, MKp), lambda i: (i, 0)),   # x batch tile
            pl.BlockSpec((MKp, Hp), lambda i: (0, 0)),   # folded (cumsum) weights
            pl.BlockSpec((1, Hp), lambda i: (0, 0)),     # layernorm gamma
            pl.BlockSpec((1, Hp), lambda i: (0, 0)),     # layernorm beta
        ],
        out_specs=pl.BlockSpec((bt, Hp), lambda i: (i, 0)),
        compiler_params=pltpu.CompilerParams(
            # Batch tiles are independent -> shardable across v7x's 2 TCs.
            dimension_semantics=("parallel",)),
    )(x_p, w_p, g_p, b_p)

    return out_p[:B, :H]


def user_encoder_reference(x, W, gamma, beta, weight_sharing=True):
    """Pure-JAX reference mirroring the PyTorch forward (eval mode)."""
    if weight_sharing:
        x = jnp.flip(jnp.cumsum(jnp.flip(x, axis=2), axis=2), axis=2)
    h = jnp.tensordot(x, W, axes=[[1, 2], [0, 1]])
    mean = jnp.mean(h, axis=-1, keepdims=True)
    var = jnp.mean(jnp.square(h - mean), axis=-1, keepdims=True)
    h = (h - mean) / jnp.sqrt(var + 1e-5)
    h = h * gamma + beta
    return jnp.maximum(h, 0.0)


if __name__ == "__main__":
    B, M, K, H = 4, 8, 5, 32   # batch, #items, rating scale, hidden dim

    key = jax.random.PRNGKey(0)
    kx, kw = jax.random.split(key, 2)

    x = jax.random.uniform(kx, (B, M, K), dtype=jnp.float32)
    # Deterministic synthetic parameters (module __init__: W is m x k x h).
    W = jax.random.uniform(kw, (M, K, H), dtype=jnp.float32) * 0.1
    gamma = jnp.ones((H,), jnp.float32)    # nn.LayerNorm default weight
    beta = jnp.zeros((H,), jnp.float32)    # nn.LayerNorm default bias

    ref = user_encoder_reference(x, W, gamma, beta, weight_sharing=True)

    # f32 compute path: tight check against the pure-JAX reference.
    out_f32 = jax.block_until_ready(
        user_encoder_forward(x, W, gamma, beta, weight_sharing=True,
                             compute_dtype=jnp.float32))
    assert out_f32.shape == (B, H)
    assert jnp.allclose(out_f32, ref, rtol=1e-4, atol=1e-4), "f32 mismatch vs reference"

    # bf16 streaming path (default / fast): tolerance loosened for the
    # bf16-rounded inputs (accumulation and epilogue stay in f32).
    out_bf16 = jax.block_until_ready(
        user_encoder_forward(x, W, gamma, beta, weight_sharing=True))
    assert out_bf16.shape == (B, H)
    assert jnp.allclose(out_bf16, ref, rtol=5e-2, atol=1e-1), "bf16 mismatch vs reference"

    print("KERNEL_OK")
</pallas_src>

<mosaic_0001>
module attributes {stable_mosaic.version = 11 : i64} {
  func.func @_user_encoder_kernel(%arg0: i32, %arg1: memref<8x128xf32, #tpu.memory_space<vmem>>, %arg2: memref<128x128xf32, #tpu.memory_space<vmem>>, %arg3: memref<1x128xf32, #tpu.memory_space<vmem>>, %arg4: memref<1x128xf32, #tpu.memory_space<vmem>>, %arg5: memref<8x128xf32, #tpu.memory_space<vmem>>) attributes {dimension_semantics = [#tpu.dimension_semantics<parallel>], iteration_bounds = array<i64: 1>, scalar_prefetch = 0 : i64, scratch_operands = 0 : i64, tpu.core_type = #tpu.core_type<tc>, window_params = [{transform_indices = @transform_0, window_bounds = array<i64: 8, 128>}, {pipeline_mode = #tpu.pipeline_mode<synchronous>, transform_indices = @transform_1, window_bounds = array<i64: 128, 128>}, {pipeline_mode = #tpu.pipeline_mode<synchronous>, transform_indices = @transform_2, window_bounds = array<i64: 1, 128>}, {pipeline_mode = #tpu.pipeline_mode<synchronous>, transform_indices = @transform_3, window_bounds = array<i64: 1, 128>}, {transform_indices = @transform_4, window_bounds = array<i64: 8, 128>}]} {
    %c0 = arith.constant 0 : index
    %c0_0 = arith.constant 0 : index
    %0 = vector.load %arg1[%c0, %c0_0] : memref<8x128xf32, #tpu.memory_space<vmem>>, vector<8x128xf32>
    %c0_1 = arith.constant 0 : index
    %c0_2 = arith.constant 0 : index
    %1 = vector.load %arg2[%c0_1, %c0_2] : memref<128x128xf32, #tpu.memory_space<vmem>>, vector<128x128xf32>
    %cst = arith.constant dense<0.000000e+00> : vector<8x128xf32>
    %2 = tpu.matmul %0, %1, %cst {dimension_numbers = #tpu.dot_dimension_numbers<[1], [0], [0], [1], [0, 0, 1, 1], [], []>} : vector<8x128xf32>, vector<128x128xf32>, vector<8x128xf32> -> vector<8x128xf32>
    %3 = tpu.iota {dimensions = array<i32: 1>} : vector<1x128xi32>
    %c32_i32 = arith.constant 32 : i32
    %4 = vector.broadcast %c32_i32 : i32 to vector<1x128xi32>
    %5 = arith.cmpi slt, %3, %4 : vector<1x128xi32>
    %6 = arith.extui %5 : vector<1x128xi1> to vector<1x128xi32>
    %7 = arith.sitofp %6 : vector<1x128xi32> to vector<1x128xf32>
    %8 = vector.broadcast %7 : vector<1x128xf32> to vector<8x128xf32>
    %9 = arith.mulf %2, %8 : vector<8x128xf32>
    %cst_3 = arith.constant dense<0.000000e+00> : vector<8xf32>
    %10 = vector.multi_reduction <add>, %9, %cst_3 [1] : vector<8x128xf32> to vector<8xf32>
    %11 = vector.shape_cast %10 : vector<8xf32> to vector<8x1xf32>
    %cst_4 = arith.constant 3.125000e-02 : f32
    %12 = vector.broadcast %cst_4 : f32 to vector<8x1xf32>
    %13 = arith.mulf %11, %12 : vector<8x1xf32>
    %14 = vector.broadcast %13 : vector<8x1xf32> to vector<8x128xf32>
    %15 = arith.subf %2, %14 : vector<8x128xf32>
    %16 = vector.broadcast %7 : vector<1x128xf32> to vector<8x128xf32>
    %17 = arith.mulf %15, %16 : vector<8x128xf32>
    %18 = arith.mulf %17, %17 : vector<8x128xf32>
    %cst_5 = arith.constant dense<0.000000e+00> : vector<8xf32>
    %19 = vector.multi_reduction <add>, %18, %cst_5 [1] : vector<8x128xf32> to vector<8xf32>
    %20 = vector.shape_cast %19 : vector<8xf32> to vector<8x1xf32>
    %cst_6 = arith.constant 3.125000e-02 : f32
    %21 = vector.broadcast %cst_6 : f32 to vector<8x1xf32>
    %22 = arith.mulf %20, %21 : vector<8x1xf32>
    %cst_7 = arith.constant 9.99999974E-6 : f32
    %23 = vector.broadcast %cst_7 : f32 to vector<8x1xf32>
    %24 = arith.addf %22, %23 : vector<8x1xf32>
    %25 = math.rsqrt %24 : vector<8x1xf32>
    %26 = vector.broadcast %25 : vector<8x1xf32> to vector<8x128xf32>
    %27 = arith.mulf %17, %26 : vector<8x128xf32>
    %c0_8 = arith.constant 0 : index
    %c0_9 = arith.constant 0 : index
    %28 = vector.load %arg3[%c0_8, %c0_9] : memref<1x128xf32, #tpu.memory_space<vmem>>, vector<1x128xf32>
    %29 = vector.broadcast %28 : vector<1x128xf32> to vector<8x128xf32>
    %30 = arith.mulf %27, %29 : vector<8x128xf32>
    %c0_10 = arith.constant 0 : index
    %c0_11 = arith.constant 0 : index
    %31 = vector.load %arg4[%c0_10, %c0_11] : memref<1x128xf32, #tpu.memory_space<vmem>>, vector<1x128xf32>
    %32 = vector.broadcast %31 : vector<1x128xf32> to vector<8x128xf32>
    %33 = arith.addf %30, %32 : vector<8x128xf32>
    %cst_12 = arith.constant 0.000000e+00 : f32
    %34 = vector.broadcast %cst_12 : f32 to vector<8x128xf32>
    %35 = arith.maximumf %33, %34 : vector<8x128xf32>
    %c0_13 = arith.constant 0 : index
    %c0_14 = arith.constant 0 : index
    %36 = vector.load %arg5[%c0_13, %c0_14] : memref<8x128xf32, #tpu.memory_space<vmem>>, vector<8x128xf32>
    tpu.vector_store %arg5[%c0_13, %c0_14], %35 {strides = array<i32>} : memref<8x128xf32, #tpu.memory_space<vmem>>, vector<8x128xf32>,
    return
  }
  func.func @transform_0(%arg0: i32) -> (i32, i32) {
    %c0_i32 = arith.constant 0 : i32
    %c0_i32_0 = arith.constant 0 : i32
    return %arg0, %c0_i32 : i32, i32
  }
  func.func @transform_1(%arg0: i32) -> (i32, i32) {
    %c0_i32 = arith.constant 0 : i32
    %c0_i32_0 = arith.constant 0 : i32
    %c0_i32_1 = arith.constant 0 : i32
    return %c0_i32, %c0_i32_0 : i32, i32
  }
  func.func @transform_2(%arg0: i32) -> (i32, i32) {
    %c0_i32 = arith.constant 0 : i32
    %c0_i32_0 = arith.constant 0 : i32
    %c0_i32_1 = arith.constant 0 : i32
    return %c0_i32, %c0_i32_0 : i32, i32
  }
  func.func @transform_3(%arg0: i32) -> (i32, i32) {
    %c0_i32 = arith.constant 0 : i32
    %c0_i32_0 = arith.constant 0 : i32
    %c0_i32_1 = arith.constant 0 : i32
    return %c0_i32, %c0_i32_0 : i32, i32
  }
  func.func @transform_4(%arg0: i32) -> (i32, i32) {
    %c0_i32 = arith.constant 0 : i32
    %c0_i32_0 = arith.constant 0 : i32
    return %arg0, %c0_i32 : i32, i32
  }
}

</mosaic_0001>

<bundles_post_ra>
// kernel: tpu_custom_call.1
= control target key start
LH: loop header
LB: loop body
LE: loop exit
PB: predicated region body
PF: predicated region fallthrough
CT: control target
= control target key end

     0   :  { %9 = vsyncpa [#allocation3], 0  ;;  %s277_s0 = inlined_call_operand.hbm [shape: f32[8,128], index: 0, kind: input, shape index: {}]   ;;  %s278_s1 = inlined_call_operand.hbm [shape: f32[128,128], index: 1, kind: input, shape index: {}]   ;;  %s279_s2 = inlined_call_operand.vmem [shape: f32[1,128], index: 2, kind: input, shape index: {}]   ;;  %s280_s3 = inlined_call_operand.vmem [shape: f32[1,128], index: 3, kind: input, shape index: {}]   ;;  %s281_s4 = inlined_call_operand.hbm [shape: f32[8,128], index: 4, kind: output, shape index: {}]  }
   0x1   :  { %10 = vsyncpa [#allocation6], 0 }
   0x2   :  { %11 = vsyncpa [#allocation4], 0  ;;  %s17_s17 = sshll.u32 %s277_s0, 4  ;;  %s231_s18 = smov [#allocation2]   ;;  %s18_s17 = int_to_ptr.hbm [resolvable:$true] %s17_s17 }
   0x3   :  { %s19_s19 = sshll.u32 %s231_s18, 4  ;;  %s27_s22 = sshll.u32 %s278_s1, 4  ;;  %s20_s19 = int_to_ptr.vmem [resolvable:$true] %s19_s19  ;;  %s28_s22 = int_to_ptr.hbm [resolvable:$true] %s27_s22 }
   0x4   :  { %22 = dma.hbm_to_vmem [thread:$0]  %s18_s17, 128, %s20_s19, [#allocation3]  }
   0x5   :  { %s232_s23 = smov [#allocation5]   ;;  %s233_s25 = smov 128  }
   0x6   :  { %s29_s24 = sshll.u32 %s232_s23, 4  ;;  %s234_s26 = smov 8   ;;  %s30_s24 = int_to_ptr.vmem [resolvable:$true] %s29_s24 }
   0x7   :  { %35 = dma.hbm_to_vmem [thread:$0]  %s28_s22, 2048, %s30_s24, [#allocation6], %s233_s25, %s233_s25, %s234_s26  }
   0x8   :  { %225 = dma.done.wait [#allocation3], 128  }
   0x9   :  { %226 = vsyncadd [#allocation3], 4294967168 }
   0xa   :  { %227 = dma.done.wait [#allocation6], 2048  }
   0xb   :  { %228 = vsyncadd [#allocation6], 4294965248  ;;  %v64_v0 = vld [vmem:[#allocation5 + $0x78] sm:$0xff]  ;;  %v63_v1 = vld [vmem:[#allocation5 + $0x70] sm:$0xff]  ;;  %v85_v17 = vlaneseq  ;;  %v235_v19 = vmov 0.0   ;;  %s236_s29 = smov [#allocation7]  }
   0xc   :  { %65 = vmatpush.msra.mxu0 %v64_v0  ;;  %v62_v2 = vld [vmem:[#allocation5 + $0x68] sm:$0xff]  ;;  %v61_v3 = vld [vmem:[#allocation5 + $0x60] sm:$0xff]  ;;  %v60_v4 = vld [vmem:[#allocation5 + $0x58] sm:$0xff]  ;;  %s129_s30 = sshll.u32 %s236_s29, 4  ;;  %s131_s7 = sshll.u32 %s281_s4, 4  ;;  %s130_s30 = int_to_ptr.vmem [resolvable:$true] %s129_s30  ;;  %s132_s7 = int_to_ptr.hbm [resolvable:$true] %s131_s7 }
   0xd   :  { %v59_v5 = vld [vmem:[#allocation5 + $0x50] sm:$0xff]  ;;  %v58_v6 = vld [vmem:[#allocation5 + $0x48] sm:$0xff]  ;;  %v57_v7 = vld [vmem:[#allocation5 + $0x40] sm:$0xff]  ;;  %v86_v18 = vand.u32 127, %v85_v17 }
   0xe   :  { %66 = vmatpush.msra.mxu0 %v63_v1  ;;  %v56_v8 = vld [vmem:[#allocation5 + $0x38] sm:$0xff]  ;;  %v55_v9 = vld [vmem:[#allocation5 + $0x30] sm:$0xff]  ;;  %v54_v10 = vld [vmem:[#allocation5 + $0x28] sm:$0xff] }
   0xf   :  { %v53_v11 = vld [vmem:[#allocation5 + $0x20] sm:$0xff]  ;;  %v52_v12 = vld [vmem:[#allocation5 + $0x18] sm:$0xff]  ;;  %v51_v13 = vld [vmem:[#allocation5 + $0x10] sm:$0xff]  ;;  %vm87_vm0 = vcmp.lt.s32.totalorder %v86_v18, 32 }
  0x10   :  { %67 = vmatpush.msra.mxu0 %v62_v2  ;;  %v50_v14 = vld [vmem:[#allocation5 + $0x8] sm:$0xff]  ;;  %v49_v15 = vld [vmem:[#allocation5] sm:$0xff]  ;;  %v48_v16 = vld [vmem:[#allocation2] sm:$0xff]  ;;  %v142_v20 = vsel %vm87_vm0, 1.0, %v235_v19 }
  0x11   :  { %v149_v37 = vld [vmem:[%s279_s2] ss:$0 sm:$0xff] }
  0x12   :  { %68 = vmatpush.msra.mxu0 %v61_v3  ;;  %v150_v40 = vld [vmem:[%s280_s3] ss:$0 sm:$0xff] }
  0x14   :  { %69 = vmatpush.msra.mxu0 %v60_v4 }
  0x16   :  { %70 = vmatpush.msra.mxu0 %v59_v5 }
  0x18   :  { %71 = vmatpush.msra.mxu0 %v58_v6 }
  0x1a   :  { %72 = vmatpush.msra.mxu0 %v57_v7 }
  0x1c   :  { %73 = vmatpush.msra.mxu0 %v56_v8 }
  0x1e   :  { %74 = vmatpush.msra.mxu0 %v55_v9 }
  0x20   :  { %75 = vmatpush.msra.mxu0 %v54_v10 }
  0x22   :  { %76 = vmatpush.msra.mxu0 %v53_v11 }
  0x24   :  { %77 = vmatpush.msra.mxu0 %v52_v12 }
  0x26   :  { %78 = vmatpush.msra.mxu0 %v51_v13 }
  0x28   :  { %79 = vmatpush.msra.mxu0 %v50_v14 }
  0x2a   :  { %80 = vmatpush.msra.mxu0 %v49_v15 }
  0x2b   :  { %81 = vmatmul.f32.vlgmr.msra.gmra.mxu0 %v48_v16 }
  0xa8   :  { %v82_v21 = vpop.f32.mrf.mxu0 }
  0xa9   :  { %v90_v22 = vmul.f32 %v142_v20, %v82_v21 }
  0xab   :  { %91 = vadd.xlane.f32.xlu0 %v90_v22 }
 0x11e   :  { %v92_v23 = vpop.xlane.xlu0 %91 }
 0x11f   :  { %v93_v24 = vmul.f32 0.03125, %v92_v23 }
 0x121   :  { %v94_v25 = vsub.f32 %v82_v21, %v93_v24 }
 0x123   :  { %v95_v26 = vmul.f32 %v142_v20, %v94_v25 }
 0x125   :  { %v96_v27 = vmul.f32 %v95_v26, %v95_v26 }
 0x127   :  { %97 = vadd.xlane.f32.xlu0 %v96_v27 }
 0x19a   :  { %v98_v28 = vpop.xlane.xlu0 %97 }
 0x19b   :  { %v99_v29 = vmul.f32 0.03125, %v98_v28 }
 0x19d   :  { %v100_v30 = vadd.f32 1e-05, %v99_v29 }
 0x19f   :  { %151 = vrsqrt.f32 %v100_v30  ;;  %vm107_vm2 = vweird.f32 %v100_v30 }
 0x1a5   :  { %v152_v31 = vpop.eup %151 }
 0x1a6   :  { %v102_v32 = vmul.f32 %v152_v31, %v100_v30  ;;  %vm108_vm1 = vweird.f32 %v152_v31 }
 0x1a7   :  { %vm109_vm3 = vmor %vm107_vm2, %vm108_vm1 }
 0x1a8   :  { %v103_v33 = vmul.f32 %v152_v31, %v102_v32 }
 0x1aa   :  { %v104_v34 = vmul.f32 0.5, %v103_v33 }
 0x1ac   :  { %v105_v35 = vsub.f32 1.5, %v104_v34 }
 0x1ae   :  { %v106_v36 = vmul.f32 %v152_v31, %v105_v35 }
 0x1b0   :  { %v110_v38 = vsel %vm109_vm3, %v152_v31, %v106_v36 }
 0x1b1   :  { %v111_v39 = vmul.f32 %v110_v38, %v95_v26 }
 0x1b3   :  { %v116_v41 = vmul.f32 %v149_v37, %v111_v39 }
 0x1b5   :  { %v121_v42 = vadd.f32 %v150_v40, %v116_v41 }
 0x1b7   :  { %v122_v43 = vmax.f32 %v121_v42, 0.0 }
 0x1b9   :  { %123 = vst [vmem:[#allocation7] sm:$0xff] %v122_v43 }
 0x1ba   :  { %134 = dma.vmem_to_hbm [thread:$0]  %s130_s30, 128, %s132_s7, [#allocation4]  }
 0x1bb   :  { %229 = dma.done.wait [#allocation4], 128  }
 0x1bc   :  { %230 = vsyncadd [#allocation4], 4294967168 }
 0x1bd   :  { %139 = vsyncpa [#allocation3], 1 }
 0x1be   :  { %140 = vsyncpa [#allocation6], 1 }
 0x1bf   :  { %141 = vsyncpa [#allocation4], 1 }

</bundles_post_ra>
